<compile_context>
chip_gen: v7x
topology: tpu7x:2x2x1
jax: 0.10.0
libtpu: 0.0.40
codegen_flags: <defaults>
</compile_context>

<pallas_src>
import jax
import jax.numpy as jnp
from jax import lax
from jax.experimental import pallas as pl
from jax.experimental.pallas import tpu as pltpu

LANES = 128
SUBLANES = 8
CHUNK_ROWS = 512          # rows per in-kernel accumulation chunk (64 vregs of f32)


def _cdiv(a, b):
    return -(-a // b)


def _round_up(a, b):
    return _cdiv(a, b) * b


def _auto_num_splits():
    """2 splits (parallel axis) on multi-TensorCore chips, 1 on v5e/v6e."""
    try:
        kind = jax.devices()[0].device_kind.lower()
    except Exception:
        return 2
    if ("v5e" in kind) or ("v6" in kind) or ("lite" in kind):
        return 1
    return 2


def _make_kernel(*, row_tile, chunk, n_rows, tiles_per_split,
                 n_full_blocks, n_grid_blocks):
    n_chunks = row_tile // chunk
    has_masked = n_grid_blocks > n_full_blocks   # any partial / over-coverage block?
    all_masked = n_full_blocks == 0

    def kernel(x_ref, y_ref, o_ref):
        c = pl.program_id(0)                     # parallel split (both TCs on v7x)
        i = pl.program_id(1)                     # reduction step within the split
        block_idx = c * tiles_per_split + i      # global (unclamped) block index

        @pl.when(i == 0)
        def _init():
            o_ref[...] = jnp.zeros_like(o_ref)

        def accum_chunk(r0, rows, masked):
            x = x_ref[pl.ds(r0, rows), :].astype(jnp.float32)
            y = y_ref[pl.ds(r0, rows), :].astype(jnp.float32)
            v = 1.0 - jnp.tanh(x * y)            # VPU mul/sub + EUP tanh
            if masked:
                # Only emitted for boundary / over-coverage blocks: zero out rows
                # beyond n_rows (undefined VMEM in the partial edge block).
                row = lax.broadcasted_iota(jnp.int32, (rows, LANES), 0)
                g_row = block_idx * row_tile + r0 + row
                v = jnp.where(g_row < n_rows, v, 0.0)
            # Fold onto the vreg-shaped resident accumulator with VPU adds only.
            o_ref[...] += v.reshape(rows // SUBLANES, SUBLANES, LANES).sum(axis=0)

        def accumulate(masked):
            if n_chunks == 1:
                accum_chunk(0, row_tile, masked)
            else:
                def body(k, carry):
                    accum_chunk(pl.multiple_of(k * chunk, chunk), chunk, masked)
                    return carry
                lax.fori_loop(0, n_chunks, body, 0)

        if not has_masked:
            accumulate(False)                    # hot path: no mask work at all
        elif all_masked:
            accumulate(True)
        else:
            @pl.when(block_idx < n_full_blocks)
            def _fast():
                accumulate(False)

            @pl.when(block_idx >= n_full_blocks)
            def _boundary():
                accumulate(True)

    return kernel


def sigmoid_loss(outputs, labels, *, row_tile=8192, num_splits=None):
    """mean(1 - tanh(outputs * labels)) as a streaming Pallas TPU reduction."""
    assert outputs.shape == labels.shape
    n_true = int(outputs.size)
    assert n_true > 0
    out_dtype = jnp.promote_types(outputs.dtype, labels.dtype)

    xf = outputs.reshape(-1)
    yf = labels.reshape(-1)

    n_rows = n_true // LANES
    n_main = n_rows * LANES
    n_tail = n_true - n_main

    # Non-lane-aligned tail (< 128 elements): tiny, compute with plain jnp.
    tail_sum = 0.0
    if n_tail:
        tx = xf[n_main:].astype(jnp.float32)
        ty = yf[n_main:].astype(jnp.float32)
        tail_sum = jnp.sum(1.0 - jnp.tanh(tx * ty))

    if n_rows == 0:
        return (jnp.asarray(tail_sum, jnp.float32) / n_true).astype(out_dtype)

    if n_tail:
        # TODO(synk): the rare non-lane-aligned case still pays one slice copy of
        # the main body; a manual-DMA tail path inside the kernel could avoid it.
        xm = xf[:n_main]
        ym = yf[:n_main]
    else:
        xm, ym = xf, yf                           # reshape below is a free bitcast
    xm = xm.reshape(n_rows, LANES)
    ym = ym.reshape(n_rows, LANES)

    # --- tiling ---------------------------------------------------------------
    rows8 = _round_up(n_rows, SUBLANES)
    if rows8 <= CHUNK_ROWS:
        row_tile = rows8
        chunk = rows8
    else:
        row_tile = (min(int(row_tile), _round_up(rows8, CHUNK_ROWS))
                    // CHUNK_ROWS) * CHUNK_ROWS
        row_tile = max(CHUNK_ROWS, row_tile)
        chunk = CHUNK_ROWS

    num_blocks = _cdiv(n_rows, row_tile)
    if num_splits is None:
        num_splits = _auto_num_splits()
    num_splits = max(1, min(int(num_splits), num_blocks))
    tiles_per_split = _cdiv(num_blocks, num_splits)
    n_grid_blocks = num_splits * tiles_per_split
    n_full_blocks = n_rows // row_tile            # blocks entirely inside n_rows

    last_block = num_blocks - 1
    if n_grid_blocks > num_blocks:
        # Over-coverage steps re-read the last (valid) block; their contribution
        # is masked to zero inside the kernel.
        def in_map(c, i):
            return (jnp.minimum(c * tiles_per_split + i, last_block), 0)
    else:
        def in_map(c, i):
            return (c * tiles_per_split + i, 0)

    kernel = _make_kernel(row_tile=row_tile, chunk=chunk, n_rows=n_rows,
                          tiles_per_split=tiles_per_split,
                          n_full_blocks=n_full_blocks,
                          n_grid_blocks=n_grid_blocks)

    partials = pl.pallas_call(
        kernel,
        out_shape=jax.ShapeDtypeStruct((num_splits, SUBLANES, LANES), jnp.float32),
        grid_spec=pltpu.PrefetchScalarGridSpec(
            num_scalar_prefetch=0,
            grid=(num_splits, tiles_per_split),
            in_specs=[
                pl.BlockSpec((row_tile, LANES), in_map),
                pl.BlockSpec((row_tile, LANES), in_map),
            ],
            # Resident (8,128) accumulator per split; squeezed leading dim.
            out_specs=pl.BlockSpec((None, SUBLANES, LANES), lambda c, i: (c, 0, 0)),
        ),
        compiler_params=pltpu.CompilerParams(
            dimension_semantics=("parallel", "arbitrary"),
            vmem_limit_bytes=40 * 1024 * 1024,
        ),
    )(xm, ym)

    # Tiny cross-split / cross-lane combine outside the kernel.
    total = jnp.sum(partials, dtype=jnp.float32) + tail_sum
    return (total / n_true).astype(out_dtype)


if __name__ == "__main__":
    key = jax.random.PRNGKey(0)
    k1, k2, k3, k4, k5, k6 = jax.random.split(key, 6)

    # Small shapes consistent with a generic (outputs, labels) pair: NCHW.
    outputs = jax.random.normal(k1, (2, 4, 16, 16), dtype=jnp.float32)
    labels = jax.random.normal(k2, (2, 4, 16, 16), dtype=jnp.float32)
    loss = jax.block_until_ready(sigmoid_loss(outputs, labels))
    ref = jnp.mean(1.0 - jnp.tanh(outputs * labels))
    assert jnp.allclose(loss, ref, atol=1e-5, rtol=1e-5), (loss, ref)

    # Non-lane-aligned input: exercises the jnp tail path + masked edge block.
    o2 = jax.random.normal(k3, (3, 5, 257), dtype=jnp.float32)
    l2 = jax.random.normal(k4, (3, 5, 257), dtype=jnp.float32)
    loss2 = jax.block_until_ready(sigmoid_loss(o2, l2))
    ref2 = jnp.mean(1.0 - jnp.tanh(o2 * l2))
    assert jnp.allclose(loss2, ref2, atol=1e-5, rtol=1e-5), (loss2, ref2)

    # Multi-block input: exercises the fast/masked two-branch split, the
    # multi-split parallel axis, and the chunked fori_loop accumulation.
    o3 = jax.random.normal(k5, (8, 64, 130), dtype=jnp.float32)
    l3 = jax.random.normal(k6, (8, 64, 130), dtype=jnp.float32)
    ref3 = jnp.mean(1.0 - jnp.tanh(o3 * l3))
    loss3a = jax.block_until_ready(sigmoid_loss(o3, l3, row_tile=512, num_splits=2))
    assert jnp.allclose(loss3a, ref3, atol=1e-5, rtol=1e-5), (loss3a, ref3)
    loss3b = jax.block_until_ready(sigmoid_loss(o3, l3))
    assert jnp.allclose(loss3b, ref3, atol=1e-5, rtol=1e-5), (loss3b, ref3)

    print("KERNEL_OK")
</pallas_src>

<mosaic_0001>
module attributes {stable_mosaic.version = 11 : i64} {
  func.func @kernel(%arg0: i32, %arg1: i32, %arg2: memref<16x128xf32, #tpu.memory_space<vmem>>, %arg3: memref<16x128xf32, #tpu.memory_space<vmem>>, %arg4: memref<1x8x128xf32, #tpu.memory_space<vmem>>) attributes {dimension_semantics = [#tpu.dimension_semantics<parallel>, #tpu.dimension_semantics<arbitrary>], iteration_bounds = array<i64: 1, 1>, scalar_prefetch = 0 : i64, scratch_operands = 0 : i64, tpu.core_type = #tpu.core_type<tc>, window_params = [{transform_indices = @transform_0, window_bounds = array<i64: 16, 128>}, {transform_indices = @transform_1, window_bounds = array<i64: 16, 128>}, {transform_indices = @transform_2, window_bounds = array<i64: 1, 8, 128>}]} {
    %c0_i32 = arith.constant 0 : i32
    %0 = arith.cmpi eq, %arg1, %c0_i32 : i32
    %1 = arith.extui %0 : i1 to i32
    %c0_i32_0 = arith.constant 0 : i32
    %2 = arith.cmpi ne, %1, %c0_i32_0 : i32
    scf.if %2 {
      %cst_11 = arith.constant 0.000000e+00 : f32
      %17 = vector.broadcast %cst_11 : f32 to vector<8x128xf32>
      %c0_12 = arith.constant 0 : index
      %c0_13 = arith.constant 0 : index
      %c0_14 = arith.constant 0 : index
      %18 = vector.load %arg4[%c0_12, %c0_13, %c0_14] : memref<1x8x128xf32, #tpu.memory_space<vmem>>, vector<1x8x128xf32>
      %19 = vector.shape_cast %18 : vector<1x8x128xf32> to vector<8x128xf32>
      %20 = vector.shape_cast %17 : vector<8x128xf32> to vector<1x8x128xf32>
      tpu.vector_store %arg4[%c0_12, %c0_13, %c0_14], %20 {strides = array<i32>} : memref<1x8x128xf32, #tpu.memory_space<vmem>>, vector<1x8x128xf32>,
    } else {
    }
    %c0 = arith.constant 0 : index
    %c0_1 = arith.constant 0 : index
    %3 = vector.load %arg2[%c0, %c0_1] : memref<16x128xf32, #tpu.memory_space<vmem>>, vector<16x128xf32>
    %c0_2 = arith.constant 0 : index
    %c0_3 = arith.constant 0 : index
    %4 = vector.load %arg3[%c0_2, %c0_3] : memref<16x128xf32, #tpu.memory_space<vmem>>, vector<16x128xf32>
    %5 = arith.mulf %3, %4 : vector<16x128xf32>
    %6 = math.tanh %5 : vector<16x128xf32>
    %cst = arith.constant 1.000000e+00 : f32
    %7 = vector.broadcast %cst : f32 to vector<16x128xf32>
    %8 = arith.subf %7, %6 : vector<16x128xf32>
    %c0_4 = arith.constant 0 : index
    %c0_5 = arith.constant 0 : index
    %c0_6 = arith.constant 0 : index
    %9 = vector.load %arg4[%c0_4, %c0_5, %c0_6] : memref<1x8x128xf32, #tpu.memory_space<vmem>>, vector<1x8x128xf32>
    %10 = vector.shape_cast %9 : vector<1x8x128xf32> to vector<8x128xf32>
    %11 = vector.shape_cast %8 : vector<16x128xf32> to vector<2x8x128xf32>
    %cst_7 = arith.constant dense<0.000000e+00> : vector<8x128xf32>
    %12 = vector.multi_reduction <add>, %11, %cst_7 [0] : vector<2x8x128xf32> to vector<8x128xf32>
    %13 = arith.addf %10, %12 : vector<8x128xf32>
    %c0_8 = arith.constant 0 : index
    %c0_9 = arith.constant 0 : index
    %c0_10 = arith.constant 0 : index
    %14 = vector.load %arg4[%c0_8, %c0_9, %c0_10] : memref<1x8x128xf32, #tpu.memory_space<vmem>>, vector<1x8x128xf32>
    %15 = vector.shape_cast %14 : vector<1x8x128xf32> to vector<8x128xf32>
    %16 = vector.shape_cast %13 : vector<8x128xf32> to vector<1x8x128xf32>
    tpu.vector_store %arg4[%c0_8, %c0_9, %c0_10], %16 {strides = array<i32>} : memref<1x8x128xf32, #tpu.memory_space<vmem>>, vector<1x8x128xf32>,
    return
  }
  func.func @transform_0(%arg0: i32, %arg1: i32) -> (i32, i32) {
    %c1_i32 = arith.constant 1 : i32
    %0 = arith.muli %arg0, %c1_i32 : i32
    %1 = arith.addi %0, %arg1 : i32
    %c0_i32 = arith.constant 0 : i32
    %c0_i32_0 = arith.constant 0 : i32
    return %1, %c0_i32 : i32, i32
  }
  func.func @transform_1(%arg0: i32, %arg1: i32) -> (i32, i32) {
    %c1_i32 = arith.constant 1 : i32
    %0 = arith.muli %arg0, %c1_i32 : i32
    %1 = arith.addi %0, %arg1 : i32
    %c0_i32 = arith.constant 0 : i32
    %c0_i32_0 = arith.constant 0 : i32
    return %1, %c0_i32 : i32, i32
  }
  func.func @transform_2(%arg0: i32, %arg1: i32) -> (i32, i32, i32) {
    %c0_i32 = arith.constant 0 : i32
    %c0_i32_0 = arith.constant 0 : i32
    %c0_i32_1 = arith.constant 0 : i32
    return %arg0, %c0_i32, %c0_i32_0 : i32, i32, i32
  }
}

</mosaic_0001>

<bundles_post_ra>
// kernel: tpu_custom_call.1
= control target key start
LH: loop header
LB: loop body
LE: loop exit
PB: predicated region body
PF: predicated region fallthrough
CT: control target
= control target key end

     0   :  { %7 = vsyncpa [#allocation3], 0  ;;  %s225_s0 = inlined_call_operand.hbm [shape: f32[16,128], index: 0, kind: input, shape index: {}]   ;;  %s226_s1 = inlined_call_operand.hbm [shape: f32[16,128], index: 1, kind: input, shape index: {}]   ;;  %s227_s2 = inlined_call_operand.hbm [shape: f32[1,8,128], index: 2, kind: output, shape index: {}]  }
   0x1   :  { %8 = vsyncpa [#allocation6], 0 }
   0x2   :  { %9 = vsyncpa [#allocation4], 0  ;;  %s169_s9 = smov [#allocation2]   ;;  %s97_s13 = scalar_lea.hbm %s225_s0, 256 }
   0x3   :  { %s19_s10 = sshll.u32 %s169_s9, 4  ;;  %p98_p0 = scmp.ne.s32.totalorder %s225_s0, %s97_s13  ;;  %s20_s10 = int_to_ptr.vmem [resolvable:$true] %s19_s10 }
   0x4   :  { %p101_p1 = scmp.lt.u32.totalorder %s97_s13, %s225_s0 }
   0x6   :  { %p103_p2 = pnand %p101_p1, %p98_p0 }
   0x8   :  { %106 = shalt.err (!%p103_p2)
}
   0x9   :  { %s107_s18 = scalar_lea.vmem %s20_s10, 256  ;;  %p112_p4 = scmp.lt.s32.totalorder %s20_s10, %s20_s10 }
   0xa   :  { %p108_p3 = scmp.ne.s32.totalorder %s20_s10, %s107_s18  ;;  %p113_p5 = scmp.lt.s32.totalorder %s107_s18, %s107_s18 }
   0xc   :  { %p114_p6 = por %p113_p5, %p112_p4 }
   0xe   :  { %p115_p7 = pnand %p114_p6, %p108_p3 }
  0x10   :  { %118 = shalt.err (!%p115_p7)
}
  0x11   :  { %s170_s19 = smov 128   ;;  %s171_s20 = smov 8  }
  0x12   :  { %25 = dma.hbm_to_vmem [thread:$0]  %s225_s0, 256, %s20_s10, [#allocation3], %s170_s19, %s170_s19, %s171_s20  }
  0x13   :  { %s172_s23 = smov [#allocation5]   ;;  %s119_s27 = scalar_lea.hbm %s226_s1, 256 }
  0x14   :  { %s35_s24 = sshll.u32 %s172_s23, 4  ;;  %p120_p8 = scmp.ne.s32.totalorder %s226_s1, %s119_s27  ;;  %s36_s24 = int_to_ptr.vmem [resolvable:$true] %s35_s24 }
  0x15   :  { %p123_p9 = scmp.lt.u32.totalorder %s119_s27, %s226_s1 }
  0x17   :  { %p125_p10 = pnand %p123_p9, %p120_p8 }
  0x19   :  { %128 = shalt.err (!%p125_p10)
}
  0x1a   :  { %s129_s4 = scalar_lea.vmem %s36_s24, 256  ;;  %p134_p12 = scmp.lt.s32.totalorder %s36_s24, %s36_s24 }
  0x1b   :  { %p130_p11 = scmp.ne.s32.totalorder %s36_s24, %s129_s4  ;;  %p135_p13 = scmp.lt.s32.totalorder %s129_s4, %s129_s4 }
  0x1d   :  { %p136_p0 = por %p135_p13, %p134_p12 }
  0x1f   :  { %p137_p1 = pnand %p136_p0, %p130_p11 }
  0x21   :  { %140 = shalt.err (!%p137_p1)
}
  0x22   :  { %41 = dma.hbm_to_vmem [thread:$0]  %s226_s1, 256, %s36_s24, [#allocation6], %s170_s19, %s170_s19, %s171_s20  }
  0x23   :  { %163 = dma.done.wait [#allocation3], 256  }
  0x24   :  { %164 = vsyncadd [#allocation3], 4294967040 }
  0x25   :  { %165 = dma.done.wait [#allocation6], 256  }
  0x26   :  { %166 = vsyncadd [#allocation6], 4294967040  ;;  %v57_v0 = vld [vmem:[#allocation2] sm:$0xff]  ;;  %v58_v1 = vld [vmem:[#allocation2 + $0x8] sm:$0xff]  ;;  %s173_s6 = smov [#allocation7]  }
  0x27   :  { %v59_v2 = vld [vmem:[#allocation5] sm:$0xff]  ;;  %v60_v3 = vld [vmem:[#allocation5 + $0x8] sm:$0xff]  ;;  %s77_s7 = sshll.u32 %s173_s6, 4  ;;  %s78_s7 = int_to_ptr.vmem [resolvable:$true] %s77_s7 }
  0x28   :  { %v61_v4 = vmul.f32 %v59_v2, %v57_v0  ;;  %v62_v5 = vmul.f32 %v60_v3, %v58_v1  ;;  %s141_s1 = scalar_lea.vmem %s78_s7, 128  ;;  %p146_p3 = scmp.lt.s32.totalorder %s78_s7, %s78_s7 }
  0x29   :  { %p142_p2 = scmp.ne.s32.totalorder %s78_s7, %s141_s1  ;;  %p147_p4 = scmp.lt.s32.totalorder %s141_s1, %s141_s1 }
  0x2a   :  { %93 = vtanh.f32 %v61_v4 }
  0x2b   :  { %95 = vtanh.f32 %v62_v5  ;;  %p148_p5 = por %p147_p4, %p146_p3 }
  0x2d   :  { %p149_p6 = pnand %p148_p5, %p142_p2 }
  0x34   :  { %v94_v6 = vpop.eup %93 }
  0x35   :  { %v96_v7 = vpop.eup %95  ;;  %v65_v8 = vsub.f32 1.0, %v94_v6 }
  0x36   :  { %v66_v9 = vsub.f32 1.0, %v96_v7 }
  0x38   :  { %v68_v10 = vadd.f32 %v66_v9, %v65_v8 }
  0x3a   :  { %70 = vst [vmem:[#allocation7] sm:$0xff] %v68_v10 }
  0x3b   :  { %152 = shalt.err (!%p149_p6)
}
  0x3c   :  { %s153_s10 = scalar_lea.hbm %s227_s2, 128 }
  0x3d   :  { %p154_p7 = scmp.ne.s32.totalorder %s227_s2, %s153_s10  ;;  %p157_p8 = scmp.lt.u32.totalorder %s153_s10, %s227_s2 }
  0x3f   :  { %p159_p9 = pnand %p157_p8, %p154_p7 }
  0x41   :  { %162 = shalt.err (!%p159_p9)
}
  0x42   :  { %80 = dma.vmem_to_hbm [thread:$0]  %s78_s7, 128, %s227_s2, [#allocation4]  }
  0x43   :  { %167 = dma.done.wait [#allocation4], 128  }
  0x44   :  { %168 = vsyncadd [#allocation4], 4294967168 }
  0x45   :  { %84 = vsyncpa [#allocation3], 1 }
  0x46   :  { %85 = vsyncpa [#allocation6], 1 }
  0x47   :  { %86 = vsyncpa [#allocation4], 1 }

</bundles_post_ra>
